<compile_context>
chip_gen: v5e
topology: v5e:2x2
jax: 0.10.0
libtpu: 0.0.40
codegen_flags: <defaults>
</compile_context>

<pallas_src>
import jax
import jax.numpy as jnp
import numpy as np
from jax.experimental import pallas as pl
from jax.experimental.pallas import tpu as pltpu


_TEMPERATURE = 1.0  # WarpingLoss hardcodes temperature = 1.0 for 'KL'
_F32_TINY = float(np.finfo(np.float32).tiny)


# ----------------------- per-tile contribution fns ------------------------- #
# Each returns the per-element contribution (tm, D) in f32; the scalar loss is
# the sum of all elements (JSD additionally scaled by 0.5/N in the wrapper).

def _jsd_tile(p, q):
    # PyTorch: m = (0.5*(p+q)).log(); 0.5*(kl(p.log(), m) + kl(q.log(), m))
    # with log_target=True  =>  sum( exp(m) * (2m - log p - log q) ).
    # exp(m) == 0.5*(p+q) (no exp needed) and log p + log q == log(p*q)
    # (2 logs/elem instead of 3).  p*q may underflow for extremely small
    # probabilities; clamp to the smallest normal f32 so the result stays
    # finite (identical to the exact form for normal-range p, q).
    m_lin = 0.5 * (p + q)
    pq = jnp.maximum(p * q, jnp.float32(_F32_TINY))
    return m_lin * (2.0 * jnp.log(m_lin) - jnp.log(pq))


def _kl_tile(a, b):
    # KLDivLoss(reduction='sum')(log_softmax(a/T, 1), softmax(b/T, 1))
    #   = sum( t * (log t - log_p) ),  t = softmax(b/T),  T = 1.0
    if _TEMPERATURE != 1.0:
        a = a / _TEMPERATURE
        b = b / _TEMPERATURE
    a_sh = a - jnp.max(a, axis=-1, keepdims=True)
    log_p = a_sh - jnp.log(jnp.sum(jnp.exp(a_sh), axis=-1, keepdims=True))
    b_sh = b - jnp.max(b, axis=-1, keepdims=True)
    eb = jnp.exp(b_sh)
    zb = jnp.sum(eb, axis=-1, keepdims=True)
    log_t = b_sh - jnp.log(zb)          # reuse the log-softmax pieces
    t = eb * (1.0 / zb)                 # per-row reciprocal, per-elem VPU mul
    return t * (log_t - log_p)


def _l2_tile(a, b):
    d = a - b
    return d * d


def _l1_tile(a, b):
    return jnp.abs(a - b)


# loss_type -> (tile_fn, transcendentals / element)
_LOSSES = {
    "JSD": (_jsd_tile, 2),
    "KL": (_kl_tile, 2),
    "L2": (_l2_tile, 0),
    "L1": (_l1_tile, 0),
}


# ------------------------------ kernel ------------------------------------- #

def _make_kernel(tile_fn, N, tm, D, tiles_per_core, needs_mask):
    def kernel(a_ref, b_ref, out_ref, acc_ref):
        c = pl.program_id(0)            # core-split axis ("parallel")
        i = pl.program_id(1)            # reduction axis  ("arbitrary")

        @pl.when(i == 0)
        def _init():
            acc_ref[...] = jnp.zeros_like(acc_ref)

        a = a_ref[...].astype(jnp.float32)
        b = b_ref[...].astype(jnp.float32)

        def accumulate(contrib):
            # Strip reduction (tm, D) -> (8, D): sublane-aligned VPU adds only;
            # the running accumulator is one vreg-strip, so no full-tile
            # accumulator load/store per step.
            acc_ref[...] += jnp.sum(contrib.reshape(tm // 8, 8, D), axis=0)

        if needs_mask:
            row_start = (c * tiles_per_core + i) * tm
            is_ragged = row_start + tm > N

            @pl.when(jnp.logical_not(is_ragged))
            def _steady():              # hot path: zero mask work
                accumulate(tile_fn(a, b))

            @pl.when(is_ragged)
            def _tail():                # only trailing / duplicated tiles
                rows = row_start + jax.lax.broadcasted_iota(
                    jnp.int32, (tm, D), 0)
                # select (not multiply) drops NaN/Inf from garbage padded rows
                accumulate(jnp.where(rows < N, tile_fn(a, b), 0.0))
        else:
            accumulate(tile_fn(a, b))

        @pl.when(i == pl.num_programs(1) - 1)
        def _finalize():
            out_ref[...] = acc_ref[...]

    return kernel


# --------------------------- tile-size policy ------------------------------ #

def _vmem_capacity_bytes():
    try:
        return int(pltpu.get_tpu_info().vmem_capacity_bytes)
    except Exception:
        return 64 * 1024 * 1024   # v7x-sized fallback; safe everywhere


def _round_up(x, m):
    return -(-x // m) * m


def _choose_tile_rows(N, D, itemsize, num_splits):
    """Size the row tile from a target HBM-bytes-per-step, bounded by VMEM."""
    vmem_cap = _vmem_capacity_bytes()
    budget = vmem_cap // 2                       # half of VMEM for the pipeline
    target_block_bytes = min(8 << 20, budget // 4)   # 2 inputs x 2 buffers
    tm = target_block_bytes // max(D * itemsize, 1)
    tm = min(tm, 8192)            # bounds the in-kernel strip-reduce length
    tm = max(8, (tm // 8) * 8)
    per_core_rows = -(-N // num_splits)
    tm = min(tm, _round_up(per_core_rows, 8))    # never bigger than needed
    return max(tm, 8)


def _vmem_limit_for(tm, D, itemsize, vmem_cap):
    live = 2 * 2 * tm * D * itemsize             # two inputs, double-buffered
    live += 4 * 8 * D * 4                        # (8, D) acc + out buffers
    limit = max(live + (4 << 20), 16 << 20)
    return int(min(limit, (vmem_cap * 3) // 4))


# ------------------------------ wrapper ------------------------------------ #

def warping_loss(original_prediction, warping_prediction, loss_type,
                 tm_override=None):
    """Pallas implementation of WarpingLoss.forward."""
    assert loss_type in _LOSSES, "No Valid Warping Loss Type"
    a = original_prediction
    b = warping_prediction
    assert a.shape == b.shape
    if a.ndim != 2:
        assert loss_type != "KL", "KL path expects 2-D (N, classes) inputs"
        a = a.reshape(-1, a.shape[-1])
        b = b.reshape(-1, b.shape[-1])
    N, D = a.shape

    itemsize = jnp.dtype(a.dtype).itemsize
    vmem_cap = _vmem_capacity_bytes()

    # Leading "parallel" axis: 2-way row split so v7x's two TensorCores each
    # reduce half the rows; on single-core chips it is just an outer loop.
    num_splits = 2 if N > 8 else 1

    tm = _choose_tile_rows(N, D, itemsize, num_splits)
    if tm_override is not None:
        tm = max(8, (int(tm_override) // 8) * 8)
    vmem_limit = _vmem_limit_for(tm, D, itemsize, vmem_cap)  # after override

    num_tiles = -(-N // tm)                          # tiles actually needed
    tiles_per_core = -(-num_tiles // num_splits)
    total_tiles = num_splits * tiles_per_core
    needs_mask = (total_tiles * tm) != N
    last_tile = num_tiles - 1

    if total_tiles > num_tiles:
        # Padded split: clamp the block index so the DMA stays in bounds; the
        # kernel's row mask zeroes the duplicated tile, so nothing is double
        # counted.
        def in_map(c, i):
            return (jnp.minimum(c * tiles_per_core + i, last_tile), 0)
    else:
        def in_map(c, i):
            return (c * tiles_per_core + i, 0)

    def out_map(c, i):
        return (c, 0)

    tile_fn, n_trans = _LOSSES[loss_type]
    kernel = _make_kernel(tile_fn, N, tm, D, tiles_per_core, needs_mask)

    cost = pl.CostEstimate(
        flops=int(10 * N * D),
        transcendentals=int(n_trans * N * D),
        bytes_accessed=int(2 * N * D * itemsize + num_splits * 8 * D * 4),
    )

    partials = pl.pallas_call(
        kernel,
        out_shape=jax.ShapeDtypeStruct((num_splits * 8, D), jnp.float32),
        grid_spec=pltpu.PrefetchScalarGridSpec(
            num_scalar_prefetch=0,
            grid=(num_splits, tiles_per_core),
            in_specs=[
                pl.BlockSpec((tm, D), in_map),
                pl.BlockSpec((tm, D), in_map),
            ],
            out_specs=pl.BlockSpec((8, D), out_map),
            scratch_shapes=[pltpu.VMEM((8, D), jnp.float32)],
        ),
        compiler_params=pltpu.CompilerParams(
            dimension_semantics=("parallel", "arbitrary"),
            vmem_limit_bytes=vmem_limit,
        ),
        cost_estimate=cost,
    )(a, b)

    total = jnp.sum(partials)           # tiny (num_splits*8, D) reduce in XLA
    if loss_type == "JSD":
        # nn.KLDivLoss(reduction='batchmean') divides by the number of rows.
        return 0.5 * total / N
    return total


# ------------------------- pure-JAX reference ------------------------------ #

def _reference(p, q, loss_type):
    p = p.astype(jnp.float32)
    q = q.astype(jnp.float32)
    if loss_type == "JSD":
        m = jnp.log(0.5 * (p + q))
        kl1 = jnp.sum(jnp.exp(m) * (m - jnp.log(p))) / p.shape[0]
        kl2 = jnp.sum(jnp.exp(m) * (m - jnp.log(q))) / q.shape[0]
        return 0.5 * (kl1 + kl2)
    if loss_type == "KL":
        log_p = jax.nn.log_softmax(p, axis=1)
        t = jax.nn.softmax(q, axis=1)
        return jnp.sum(t * (jnp.log(t) - log_p))
    if loss_type == "L2":
        return jnp.sum((p - q) ** 2)
    return jnp.sum(jnp.abs(p - q))


# ------------------------------- main -------------------------------------- #

if __name__ == "__main__":
    key = jax.random.PRNGKey(0)
    k1, k2, k3, k4 = jax.random.split(key, 4)

    # Case A: N deliberately NOT a multiple of 8 -> ragged tail tile + mask.
    N, D = 20, 128
    orig_logits = jax.random.normal(k1, (N, D), dtype=jnp.float32)
    warp_logits = jax.random.normal(k2, (N, D), dtype=jnp.float32)
    # JSD in the original module expects probability distributions per row.
    orig_prob = jax.nn.softmax(orig_logits, axis=-1)
    warp_prob = jax.nn.softmax(warp_logits, axis=-1)

    cases = {
        "JSD": (orig_prob, warp_prob),
        "KL": (orig_logits, warp_logits),
        "L2": (orig_logits, warp_logits),
        "L1": (orig_logits, warp_logits),
    }

    for loss_type, (x, y) in cases.items():
        ref = jax.block_until_ready(_reference(x, y, loss_type))
        # 1) auto-sized tile (core split, masked trailing tile).
        out = jax.block_until_ready(warping_loss(x, y, loss_type))
        assert np.allclose(np.asarray(out), np.asarray(ref),
                           rtol=1e-4, atol=1e-4), (loss_type, out, ref)
        # 2) forced small tile: multi-step grid + accumulator + masked tail.
        out2 = jax.block_until_ready(
            warping_loss(x, y, loss_type, tm_override=8))
        assert np.allclose(np.asarray(out2), np.asarray(ref),
                           rtol=1e-4, atol=1e-4), (loss_type, out2, ref)

    # Case B: odd tile count -> exercises the clamped duplicate-tile path of
    # the 2-way core split (5 real tiles padded to 2 x 3).
    N2, D2 = 300, 128
    a2 = jax.random.normal(k3, (N2, D2), dtype=jnp.float32)
    b2 = jax.random.normal(k4, (N2, D2), dtype=jnp.float32)
    ref2 = jax.block_until_ready(_reference(a2, b2, "L2"))
    out3 = jax.block_until_ready(warping_loss(a2, b2, "L2", tm_override=64))
    assert np.allclose(np.asarray(out3), np.asarray(ref2),
                       rtol=1e-4, atol=1e-4), ("L2-multi", out3, ref2)

    print("KERNEL_OK")
</pallas_src>

<mosaic_0001>
module attributes {stable_mosaic.version = 11 : i64} {
  func.func @kernel(%arg0: i32, %arg1: i32, %arg2: memref<16x128xf32, #tpu.memory_space<vmem>>, %arg3: memref<16x128xf32, #tpu.memory_space<vmem>>, %arg4: memref<8x128xf32, #tpu.memory_space<vmem>>, %arg5: memref<8x128xf32, #tpu.memory_space<vmem>>) attributes {dimension_semantics = [#tpu.dimension_semantics<parallel>, #tpu.dimension_semantics<arbitrary>], iteration_bounds = array<i64: 2, 1>, scalar_prefetch = 0 : i64, scratch_operands = 1 : i64, tpu.core_type = #tpu.core_type<tc>, window_params = [{transform_indices = @transform_0, window_bounds = array<i64: 16, 128>}, {transform_indices = @transform_1, window_bounds = array<i64: 16, 128>}, {transform_indices = @transform_2, window_bounds = array<i64: 8, 128>}]} {
    %c0_i32 = arith.constant 0 : i32
    %0 = arith.cmpi eq, %arg1, %c0_i32 : i32
    %1 = arith.extui %0 : i1 to i32
    %c0_i32_0 = arith.constant 0 : i32
    %2 = arith.cmpi ne, %1, %c0_i32_0 : i32
    scf.if %2 {
      %cst = arith.constant 0.000000e+00 : f32
      %18 = vector.broadcast %cst : f32 to vector<8x128xf32>
      %c0_9 = arith.constant 0 : index
      %c0_10 = arith.constant 0 : index
      %19 = vector.load %arg5[%c0_9, %c0_10] : memref<8x128xf32, #tpu.memory_space<vmem>>, vector<8x128xf32>
      tpu.vector_store %arg5[%c0_9, %c0_10], %18 {strides = array<i32>} : memref<8x128xf32, #tpu.memory_space<vmem>>, vector<8x128xf32>,
    } else {
    }
    %c0 = arith.constant 0 : index
    %c0_1 = arith.constant 0 : index
    %3 = vector.load %arg2[%c0, %c0_1] : memref<16x128xf32, #tpu.memory_space<vmem>>, vector<16x128xf32>
    %c0_2 = arith.constant 0 : index
    %c0_3 = arith.constant 0 : index
    %4 = vector.load %arg3[%c0_2, %c0_3] : memref<16x128xf32, #tpu.memory_space<vmem>>, vector<16x128xf32>
    %c1_i32 = arith.constant 1 : i32
    %5 = arith.muli %arg0, %c1_i32 : i32
    %6 = arith.addi %5, %arg1 : i32
    %c16_i32 = arith.constant 16 : i32
    %7 = arith.muli %6, %c16_i32 : i32
    %c16_i32_4 = arith.constant 16 : i32
    %8 = arith.addi %7, %c16_i32_4 : i32
    %c20_i32 = arith.constant 20 : i32
    %9 = arith.cmpi sgt, %8, %c20_i32 : i32
    %true = arith.constant true
    %10 = arith.xori %9, %true : i1
    %11 = arith.extui %10 : i1 to i32
    %c0_i32_5 = arith.constant 0 : i32
    %12 = arith.cmpi ne, %11, %c0_i32_5 : i32
    scf.if %12 {
      %18 = arith.addf %3, %4 : vector<16x128xf32>
      %cst = arith.constant 5.000000e-01 : f32
      %19 = vector.broadcast %cst : f32 to vector<16x128xf32>
      %20 = arith.mulf %19, %18 : vector<16x128xf32>
      %21 = arith.mulf %3, %4 : vector<16x128xf32>
      %cst_9 = arith.constant 1.17549435E-38 : f32
      %22 = vector.broadcast %cst_9 : f32 to vector<16x128xf32>
      %23 = arith.maximumf %21, %22 : vector<16x128xf32>
      %24 = math.log %20 : vector<16x128xf32>
      %cst_10 = arith.constant 2.000000e+00 : f32
      %25 = vector.broadcast %cst_10 : f32 to vector<16x128xf32>
      %26 = arith.mulf %25, %24 : vector<16x128xf32>
      %27 = math.log %23 : vector<16x128xf32>
      %28 = arith.subf %26, %27 : vector<16x128xf32>
      %29 = arith.mulf %20, %28 : vector<16x128xf32>
      %c0_11 = arith.constant 0 : index
      %c0_12 = arith.constant 0 : index
      %30 = vector.load %arg5[%c0_11, %c0_12] : memref<8x128xf32, #tpu.memory_space<vmem>>, vector<8x128xf32>
      %31 = vector.shape_cast %29 : vector<16x128xf32> to vector<2x8x128xf32>
      %cst_13 = arith.constant dense<0.000000e+00> : vector<8x128xf32>
      %32 = vector.multi_reduction <add>, %31, %cst_13 [0] : vector<2x8x128xf32> to vector<8x128xf32>
      %33 = arith.addf %30, %32 : vector<8x128xf32>
      %c0_14 = arith.constant 0 : index
      %c0_15 = arith.constant 0 : index
      %34 = vector.load %arg5[%c0_14, %c0_15] : memref<8x128xf32, #tpu.memory_space<vmem>>, vector<8x128xf32>
      tpu.vector_store %arg5[%c0_14, %c0_15], %33 {strides = array<i32>} : memref<8x128xf32, #tpu.memory_space<vmem>>, vector<8x128xf32>,
    } else {
    }
    %13 = arith.extui %9 : i1 to i32
    %c0_i32_6 = arith.constant 0 : i32
    %14 = arith.cmpi ne, %13, %c0_i32_6 : i32
    scf.if %14 {
      %18 = tpu.iota {dimensions = array<i32: 0>} : vector<16x128xi32>
      %19 = vector.broadcast %7 : i32 to vector<16x128xi32>
      %20 = arith.addi %19, %18 : vector<16x128xi32>
      %c20_i32_9 = arith.constant 20 : i32
      %21 = vector.broadcast %c20_i32_9 : i32 to vector<16x128xi32>
      %22 = arith.cmpi slt, %20, %21 : vector<16x128xi32>
      %23 = arith.addf %3, %4 : vector<16x128xf32>
      %cst = arith.constant 5.000000e-01 : f32
      %24 = vector.broadcast %cst : f32 to vector<16x128xf32>
      %25 = arith.mulf %24, %23 : vector<16x128xf32>
      %26 = arith.mulf %3, %4 : vector<16x128xf32>
      %cst_10 = arith.constant 1.17549435E-38 : f32
      %27 = vector.broadcast %cst_10 : f32 to vector<16x128xf32>
      %28 = arith.maximumf %26, %27 : vector<16x128xf32>
      %29 = math.log %25 : vector<16x128xf32>
      %cst_11 = arith.constant 2.000000e+00 : f32
      %30 = vector.broadcast %cst_11 : f32 to vector<16x128xf32>
      %31 = arith.mulf %30, %29 : vector<16x128xf32>
      %32 = math.log %28 : vector<16x128xf32>
      %33 = arith.subf %31, %32 : vector<16x128xf32>
      %34 = arith.mulf %25, %33 : vector<16x128xf32>
      %cst_12 = arith.constant 0.000000e+00 : f32
      %35 = vector.broadcast %cst_12 : f32 to vector<16x128xf32>
      %36 = arith.select %22, %34, %35 : vector<16x128xi1>, vector<16x128xf32>
      %c0_13 = arith.constant 0 : index
      %c0_14 = arith.constant 0 : index
      %37 = vector.load %arg5[%c0_13, %c0_14] : memref<8x128xf32, #tpu.memory_space<vmem>>, vector<8x128xf32>
      %38 = vector.shape_cast %36 : vector<16x128xf32> to vector<2x8x128xf32>
      %cst_15 = arith.constant dense<0.000000e+00> : vector<8x128xf32>
      %39 = vector.multi_reduction <add>, %38, %cst_15 [0] : vector<2x8x128xf32> to vector<8x128xf32>
      %40 = arith.addf %37, %39 : vector<8x128xf32>
      %c0_16 = arith.constant 0 : index
      %c0_17 = arith.constant 0 : index
      %41 = vector.load %arg5[%c0_16, %c0_17] : memref<8x128xf32, #tpu.memory_space<vmem>>, vector<8x128xf32>
      tpu.vector_store %arg5[%c0_16, %c0_17], %40 {strides = array<i32>} : memref<8x128xf32, #tpu.memory_space<vmem>>, vector<8x128xf32>,
    } else {
    }
    %c0_i32_7 = arith.constant 0 : i32
    %15 = arith.cmpi eq, %arg1, %c0_i32_7 : i32
    %16 = arith.extui %15 : i1 to i32
    %c0_i32_8 = arith.constant 0 : i32
    %17 = arith.cmpi ne, %16, %c0_i32_8 : i32
    scf.if %17 {
      %c0_9 = arith.constant 0 : index
      %c0_10 = arith.constant 0 : index
      %18 = vector.load %arg5[%c0_9, %c0_10] : memref<8x128xf32, #tpu.memory_space<vmem>>, vector<8x128xf32>
      %c0_11 = arith.constant 0 : index
      %c0_12 = arith.constant 0 : index
      %19 = vector.load %arg4[%c0_11, %c0_12] : memref<8x128xf32, #tpu.memory_space<vmem>>, vector<8x128xf32>
      tpu.vector_store %arg4[%c0_11, %c0_12], %18 {strides = array<i32>} : memref<8x128xf32, #tpu.memory_space<vmem>>, vector<8x128xf32>,
    } else {
    }
    return
  }
  func.func @transform_0(%arg0: i32, %arg1: i32) -> (i32, i32) {
    %c1_i32 = arith.constant 1 : i32
    %0 = arith.muli %arg0, %c1_i32 : i32
    %1 = arith.addi %0, %arg1 : i32
    %c0_i32 = arith.constant 0 : i32
    %c0_i32_0 = arith.constant 0 : i32
    return %1, %c0_i32 : i32, i32
  }
  func.func @transform_1(%arg0: i32, %arg1: i32) -> (i32, i32) {
    %c1_i32 = arith.constant 1 : i32
    %0 = arith.muli %arg0, %c1_i32 : i32
    %1 = arith.addi %0, %arg1 : i32
    %c0_i32 = arith.constant 0 : i32
    %c0_i32_0 = arith.constant 0 : i32
    return %1, %c0_i32 : i32, i32
  }
  func.func @transform_2(%arg0: i32, %arg1: i32) -> (i32, i32) {
    %c0_i32 = arith.constant 0 : i32
    %c0_i32_0 = arith.constant 0 : i32
    return %arg0, %c0_i32 : i32, i32
  }
}

</mosaic_0001>

<bundles_post_ra>
// kernel: tpu_custom_call.1
= control target key start
LH: loop header
LB: loop body
LE: loop exit
PB: predicated region body
PF: predicated region fallthrough
CT: control target
= control target key end

     0   :  { %7 = vsyncpa [#allocation4], 0  ;;  %s974_s0 = inlined_call_operand.hbm [shape: f32[20,128], index: 0, kind: input, shape index: {}]   ;;  %s975_s1 = inlined_call_operand.hbm [shape: f32[20,128], index: 1, kind: input, shape index: {}]   ;;  %s976_s2 = inlined_call_operand.hbm [shape: f32[16,128], index: 2, kind: output, shape index: {}]  }
   0x1   :  { %9 = vsyncpa [#allocation4 + $0x1], 0 }
   0x2   :  { %10 = vsyncpa [#allocation7], 0 }
   0x3   :  { %12 = vsyncpa [#allocation7 + $0x1], 0 }
   0x4   :  { %13 = vsyncpa [#allocation5], 0 }
   0x5   :  { %15 = vsyncpa [#allocation5 + $0x1], 0  ;;  %s753_s9 = smov 0   ;;  %s755_s10 = smov 0  }
   0x6   :  { %s757_s11 = smov 0   ;;  %s759_s12 = smov 0  }
   0x7   :  { %s761_s13 = smov 0   ;;  %s763_s14 = smov 0  }
   0x8 LB: > { %s456_s15 = sadd.s32 4294967295, %s729_s14   ;;  %s457_s16 = sadd.s32 4294967294, %s729_s14   ;;  %s729_s14 = sphi %s763_s14, %s21_s14   ;;  %s725_s13 = sphi %s761_s13, %s987_s13   ;;  %s721_s12 = sphi %s759_s12, %s986_s12   ;;  %s717_s11 = sphi %s757_s11, %s985_s11   ;;  %s713_s10 = sphi %s755_s10, %s984_s10   ;;  %s709_s9 = sphi %s753_s9, %s983_s9  }
   0x9   : > { %s33_s17 = sadd.s32 1, %s725_s13  ;;  %s42_s18 = sadd.s32 1, %s717_s11 }
   0xa   : > { %p35_p0 = scmp.ge.s32.totalorder %s33_s17, 2  ;;  %p49_p1 = scmp.ne.s32.totalorder %s717_s11, %s713_s10 }
   0xb   : > { %p50_p2 = scmp.eq.s32.totalorder %s729_s14, 0  ;;  %p55_p3 = scmp.ne.s32.totalorder %s713_s10, %s709_s9 }
   0xc   : > { %s989_s17 = smov (%p35_p0, %s33_s17), 0  ;;  %p56_p5 = scmp.eq.s32.totalorder %s456_s15, 0 }
   0xd   : > { %p794_p4 = por %p50_p2, %p49_p1  ;;  %s39_s20 = ssub.s32 %s725_s13, %s989_s17 }
   0xe   : > { %p107_p6 = scmp.eq.s32.totalorder %s456_s15, 1  ;;  %p40_p7 = scmp.eq.s32.totalorder %s39_s20, 0 }
   0xf   : > { %p800_p8 = por %p56_p5, %p55_p3  ;;  %p113_p10 = scmp.eq.s32.totalorder %s457_s16, 1 }
  0x10   : > { %p804_p9 = por %p107_p6, %p49_p1  ;;  %p459_p12 = scmp.ge.s32.totalorder %s729_s14, 2 }
  0x11   : > { %s809_s23 = scalar_select %p40_p7, %s717_s11, %s42_s18  }
  0x12   : > { %p811_p11 = por %p113_p10, %p55_p3  ;;  %129 = sbr.rel (%p459_p12) target bundleno = 95 (0x5f), region = 16 }
  0x17   : > { %132 = sbr.rel (!%p794_p4) target bundleno = 59 (0x3b), region = 20  ;;  %s133_s25 = sand.u32 (%p794_p4), 1, %s717_s11  }
  0x18   : > { %s461_s26 = sshll.u32 (%p794_p4), %s725_s13, 1  ;;  %s460_s27 = sshll.u32 (%p794_p4), %s133_s25, 4 }
  0x19   : > { %s140_s28 = ssub.s32 (%p794_p4), 3, %s461_s26  ;;  %s825_s4 = scalar_lea.sflag (%p794_p4), [#allocation4], %s133_s25 }
  0x1a   : > { %p141_p13 = scmp.lt.s32.totalorder (%p794_p4), %s140_s28, 2  ;;  %s137_s5 = scalar_lea.vmem (%p794_p4), [#allocation3], %s460_s27 }
  0x1c   : > { %s991_s28 = smov (!%p141_p13, %s140_s28), 2 }
  0x1d   : > { %s462_s29 = sshll.u32 %s991_s28, 3 }
  0x1e   : > { %s144_s30 = ssub.s32 16, %s462_s29 }
  0x1f   : > { %s145_s3 = sshll.u32 %s144_s30, 4 }
  0x20   : > { %146 = vsyncadd %s825_s4, %s145_s3  ;;  %p828_p0 = scmp.ne.s32.totalorder %s462_s29, 0  ;;  %s485_s7 = sshll.u32 %s725_s13, 4 }
  0x21   : > { %s149_s16 = scalar_lea.hbm %s974_s0, %s485_s7  ;;  %s836_s18 = sshll.u32 %s137_s5, 4  ;;  %s154_s18 = int_to_ptr.vmem [resolvable:$true] %s836_s18 }
  0x22   : > { %s151_s20 = sshll.u32 %s149_s16, 4  ;;  %s466_s25 = sshll.u32 %s991_s28, 7  ;;  %s839_s20 = int_to_ptr.hbm [resolvable:$true] %s151_s20 }
  0x23   : > { %s565_s26 = sshra.s32 %s839_s20, 4  ;;  %s567_s27 = sshrl.u32 %s466_s25, 4  ;;  %s566_s26 = int_to_ptr.hbm [resolvable:$true] %s565_s26 }
  0x24   : > { %s572_s29 = scalar_lea.hbm %s566_s26, %s567_s27  ;;  %s576_s5 = scalar_lea.hbm %s974_s0, 24 }
  0x25   : > { %p573_p1 = scmp.ne.s32.totalorder %s566_s26, %s572_s29  ;;  %p578_p5 = scmp.lt.s32.totalorder %s576_s5, %s572_s29 }
  0x27   : > { %p574_p2 = pnand %p573_p1, %p828_p0 }
  0x29   : > { %p575_p3 = pneg %p574_p2 }
  0x2b   : > { %p580_p6 = pnand %p578_p5, %p575_p3 }
  0x2d   : > { %583 = shalt.err (!%p580_p6)
}
  0x2e   : > { %s584_s7 = sshra.s32 %s154_s18, 4  ;;  %s731_s15 = smov [#allocation3]   ;;  %s585_s7 = int_to_ptr.vmem [resolvable:$true] %s584_s7 }
  0x2f   : > { %s591_s8 = scalar_lea.vmem %s585_s7, %s567_s27  ;;  %s595_s16 = scalar_lea.vmem %s731_s15, 32 }
  0x30   : > { %p592_p7 = scmp.ne.s32.totalorder %s585_s7, %s591_s8  ;;  %p597_p1 = scmp.lt.s32.totalorder %s595_s16, %s591_s8 }
  0x32   : > { %p593_p10 = pnand %p592_p7, %p828_p0 }
  0x34   : > { %p594_p13 = pneg %p593_p10 }
  0x36   : > { %p599_p2 = pnand %p597_p1, %p594_p13 }
  0x38   : > { %602 = shalt.err (!%p599_p2)
}
  0x39   : > { %s732_s26 = smov 128   ;;  %s733_s29 = smov 8  }
  0x3a   : > { %159 = dma.hbm_to_vmem [thread:$0]  (%p828_p0), %s839_s20, %s466_s25, %s154_s18, %s825_s4, %s732_s26, %s732_s26, %s733_s29  }
  0x3b PF: > { %162 = sbr.rel (!%p794_p4) target bundleno = 95 (0x5f), region = 24  ;;  %s163_s27 = sand.u32 (%p794_p4), 1, %s717_s11  }
  0x3c   : > { %s468_s30 = sshll.u32 (%p794_p4), %s725_s13, 1  ;;  %s467_s3 = sshll.u32 (%p794_p4), %s163_s27, 4 }
  0x3d   : > { %s170_s5 = ssub.s32 (%p794_p4), 3, %s468_s30  ;;  %s869_s15 = scalar_lea.sflag (%p794_p4), [#allocation7], %s163_s27 }
  0x3e   : > { %p171_p3 = scmp.lt.s32.totalorder (%p794_p4), %s170_s5, 2  ;;  %s167_s28 = scalar_lea.vmem (%p794_p4), [#allocation6], %s467_s3 }
  0x40   : > { %s993_s5 = smov (!%p171_p3, %s170_s5), 2 }
  0x41   : > { %s469_s7 = sshll.u32 %s993_s5, 3 }
  0x42   : > { %s174_s8 = ssub.s32 16, %s469_s7 }
  0x43   : > { %s175_s6 = sshll.u32 %s174_s8, 4 }
  0x44   : > { %176 = vsyncadd %s869_s15, %s175_s6  ;;  %p872_p4 = scmp.ne.s32.totalorder %s469_s7, 0  ;;  %s486_s4 = sshll.u32 %s725_s13, 4 }
  0x45   : > { %s179_s25 = scalar_lea.hbm %s975_s1, %s486_s4  ;;  %s880_s16 = sshll.u32 %s167_s28, 4  ;;  %s184_s16 = int_to_ptr.vmem [resolvable:$true] %s880_s16 }
  0x46   : > { %s181_s26 = sshll.u32 %s179_s25, 4  ;;  %s473_s29 = sshll.u32 %s993_s5, 7  ;;  %s883_s26 = int_to_ptr.hbm [resolvable:$true] %s181_s26 }
  0x47   : > { %s604_s27 = sshra.s32 %s883_s26, 4  ;;  %s606_s30 = sshrl.u32 %s473_s29, 4  ;;  %s605_s27 = int_to_ptr.hbm [resolvable:$true] %s604_s27 }
  0x48   : > { %s611_s3 = scalar_lea.hbm %s605_s27, %s606_s30  ;;  %s615_s6 = scalar_lea.hbm %s975_s1, 24 }
  0x49   : > { %p612_p0 = scmp.ne.s32.totalorder %s605_s27, %s611_s3  ;;  %p617_p7 = scmp.lt.s32.totalorder %s615_s6, %s611_s3 }
  0x4b   : > { %p613_p5 = pnand %p612_p0, %p872_p4 }
  0x4d   : > { %p614_p6 = pneg %p613_p5 }
  0x4f   : > { %p619_p10 = pnand %p617_p7, %p614_p6 }
  0x51   : > { %622 = shalt.err (!%p619_p10)
}
  0x52   : > { %s623_s28 = sshra.s32 %s184_s16, 4  ;;  %s734_s18 = smov [#allocation6]   ;;  %s624_s28 = int_to_ptr.vmem [resolvable:$true] %s623_s28 }
  0x53   : > { %s630_s4 = scalar_lea.vmem %s624_s28, %s606_s30  ;;  %s634_s20 = scalar_lea.vmem %s734_s18, 32 }
  0x54   : > { %p631_p13 = scmp.ne.s32.totalorder %s624_s28, %s630_s4  ;;  %p636_p3 = scmp.lt.s32.totalorder %s634_s20, %s630_s4 }
  0x56   : > { %p632_p1 = pnand %p631_p13, %p872_p4 }
  0x58   : > { %p633_p2 = pneg %p632_p1 }
  0x5a   : > { %p638_p0 = pnand %p636_p3, %p633_p2 }
  0x5c   : > { %641 = shalt.err (!%p638_p0)
}
  0x5d   : > { %s735_s25 = smov 128   ;;  %s736_s27 = smov 8  }
  0x5e   : > { %189 = dma.hbm_to_vmem [thread:$0]  (%p872_p4), %s883_s26, %s473_s29, %s184_s16, %s869_s15, %s735_s25, %s735_s25, %s736_s27  }
  0x5f PF: > { %p474_p5 = scmp.ge.s32.totalorder %s729_s14, 1  ;;  %p191_p6 = scmp.lt.s32.totalorder %s729_s14, 3 }
  0x61   : > { %p192_p7 = pnand %p474_p5, %p191_p6 }
  0x62   : > { %s909_s30 = sand.u32 (!%p192_p7), 1, %s713_s10  }
  0x63   : > { %195 = sbr.rel (%p192_p7) target bundleno = 189 (0xbd), region = 28  ;;  %s475_s3 = sshll.u32 (!%p192_p7), %s909_s30, 4 }
  0x64   : > { %s198_s7 = scalar_lea.sflag (!%p192_p7), [#allocation4], %s909_s30  ;;  %s201_s19 = scalar_lea.vmem (!%p192_p7), [#allocation3], %s475_s3 }
  0x68   : > { %696 = dma.done.wait (%p800_p8), %s198_s7, 256  }
  0x69   : > { %698 = vsyncadd (%p800_p8), %s198_s7, 4294967040  ;;  %s208_s5 = scalar_lea.sflag [#allocation7], %s909_s30  ;;  %s211_s15 = scalar_lea.vmem [#allocation6], %s475_s3 }
  0x6a   : > { %700 = dma.done.wait (%p800_p8), %s208_s5, 256  }
  0x6b   : > { %702 = vsyncadd (%p800_p8), %s208_s5, 4294967040  ;;  %s477_s16 = sshll.u32 %s909_s30, 3  ;;  %s478_s26 = sshll.u32 %s721_s12, 4  ;;  %v737_v0 = vmov 0.0   ;;  %v255_v1 = vld [vmem:[%s201_s19] sm:$0xff]  ;;  %v256_v2 = vld [vmem:[%s201_s19 + $0x8] sm:$0xff] }
  0x6c   : > { %254 = vst [vmem:[#allocation2] sm:$0xff] %v737_v0  ;;  %s926_s29 = sadd.s32 16, %s478_s26  ;;  %v257_v3 = vld [vmem:[%s211_s15] sm:$0xff]  ;;  %v258_v4 = vld [vmem:[%s211_s15 + $0x8] sm:$0xff]  ;;  %s928_s8 = scalar_lea.vmem [#allocation8], %s477_s16 }
  0x6d   : > { %p479_p4 = scmp.gt.s32.totalorder %s926_s29, 20 }
  0x6f   : > { %266 = sbr.rel (%p479_p4) target bundleno = 141 (0x8d), region = 44 }
  0x74   : > { %v267_v5 = vadd.f32 %v257_v3, %v255_v1  ;;  %v268_v6 = vadd.f32 %v258_v4, %v256_v2  ;;  %v271_v7 = vmul.f32 %v257_v3, %v255_v1  ;;  %v272_v8 = vmul.f32 %v258_v4, %v256_v2  ;;  %v289_v27 = vld [vmem:[#allocation2] sm:$0xff] }
  0x76   : > { %v269_v9 = vmul.f32 0.5, %v267_v5  ;;  %v270_v10 = vmul.f32 0.5, %v268_v6  ;;  %v273_v11 = vmax.f32 %v271_v7, 1.1754944e-38  ;;  %v274_v12 = vmax.f32 %v272_v8, 1.1754944e-38 }
  0x78   : > { %549 = vlog2.f32 %v269_v9 }
  0x79   : > { %551 = vlog2.f32 %v270_v10 }
  0x7a   : > { %553 = vlog2.f32 %v273_v11 }
  0x7b   : > { %555 = vlog2.f32 %v274_v12 }
  0x7e   : > { %v550_v13 = vpop.eup %549 }
  0x7f   : > { %v552_v14 = vpop.eup %551  ;;  %v276_v15 = vmul.f32 0.6931472, %v550_v13 }
  0x80   : > { %v554_v16 = vpop.eup %553  ;;  %v278_v17 = vmul.f32 0.6931472, %v552_v14 }
  0x81   : > { %v556_v18 = vpop.eup %555  ;;  %v279_v19 = vmul.f32 2.0, %v276_v15  ;;  %v282_v20 = vmul.f32 0.6931472, %v554_v16 }
  0x82   : > { %v280_v21 = vmul.f32 2.0, %v278_v17  ;;  %v284_v22 = vmul.f32 0.6931472, %v556_v18 }
  0x83   : > { %v285_v23 = vsub.f32 %v279_v19, %v282_v20 }
  0x84   : > { %v286_v24 = vsub.f32 %v280_v21, %v284_v22 }
  0x85   : > { %v287_v25 = vmul.f32 %v285_v23, %v269_v9 }
  0x86   : > { %v288_v26 = vmul.f32 %v286_v24, %v270_v10 }
  0x88   : > { %v290_v28 = vadd.f32 %v288_v26, %v287_v25 }
  0x8a   : > { %v291_v29 = vadd.f32 %v290_v28, %v289_v27 }
  0x8c   : > { %292 = vst [vmem:[#allocation2] sm:$0xff] %v291_v29 }
  0x8d PF: > { %p480_p8 = scmp.le.s32.totalorder %s926_s29, 20 }
  0x8f   : > { %295 = sbr.rel (%p480_p8) target bundleno = 174 (0xae), region = 48 }
  0x94   : > { %v304_v30 = vadd.f32 %v257_v3, %v255_v1  ;;  %v305_v31 = vadd.f32 %v258_v4, %v256_v2  ;;  %v296_v32 = vlaneseq  ;;  %v308_v33 = vmul.f32 %v257_v3, %v255_v1  ;;  %v328_v60 = vld [vmem:[#allocation2] sm:$0xff] }
  0x95   : > { %v309_v34 = vmul.f32 %v258_v4, %v256_v2  ;;  %v299_v41 = vstv %s478_s26 }
  0x96   : > { %v306_v35 = vmul.f32 0.5, %v304_v30  ;;  %v307_v36 = vmul.f32 0.5, %v305_v31  ;;  %v310_v37 = vmax.f32 %v308_v33, 1.1754944e-38  ;;  %v297_v39 = vshrl.u32 %v296_v32, 7 }
  0x97   : > { %v311_v38 = vmax.f32 %v309_v34, 1.1754944e-38 }
  0x98   : > { %557 = vlog2.f32 %v306_v35  ;;  %v298_v40 = vadd.s32 8, %v297_v39  ;;  %v300_v46 = vadd.s32 %v299_v41, %v297_v39 }
  0x99   : > { %559 = vlog2.f32 %v307_v36 }
  0x9a   : > { %561 = vlog2.f32 %v310_v37  ;;  %v301_v49 = vadd.s32 %v299_v41, %v298_v40  ;;  %vm302_vm0 = vcmp.lt.s32.totalorder %v300_v46, 20 }
  0x9b   : > { %563 = vlog2.f32 %v311_v38 }
  0x9c   : > { %vm303_vm1 = vcmp.lt.s32.totalorder %v301_v49, 20 }
  0x9e   : > { %v558_v42 = vpop.eup %557 }
  0x9f   : > { %v560_v43 = vpop.eup %559  ;;  %v313_v44 = vmul.f32 0.6931472, %v558_v42 }
  0xa0   : > { %v562_v45 = vpop.eup %561  ;;  %v315_v47 = vmul.f32 0.6931472, %v560_v43 }
  0xa1   : > { %v564_v48 = vpop.eup %563  ;;  %v316_v50 = vmul.f32 2.0, %v313_v44  ;;  %v319_v51 = vmul.f32 0.6931472, %v562_v45 }
  0xa2   : > { %v317_v52 = vmul.f32 2.0, %v315_v47  ;;  %v321_v53 = vmul.f32 0.6931472, %v564_v48 }
  0xa3   : > { %v322_v54 = vsub.f32 %v316_v50, %v319_v51 }
  0xa4   : > { %v323_v55 = vsub.f32 %v317_v52, %v321_v53 }
  0xa5   : > { %v324_v56 = vmul.f32 %v322_v54, %v306_v35 }
  0xa6   : > { %v325_v57 = vmul.f32 %v323_v55, %v307_v36 }
  0xa7   : > { %v326_v58 = vsel %vm302_vm0, %v324_v56, 0.0 }
  0xa8   : > { %v327_v59 = vsel %vm303_vm1, %v325_v57, 0.0 }
  0xa9   : > { %v329_v61 = vadd.f32 %v327_v59, %v326_v58 }
  0xab   : > { %v330_v62 = vadd.f32 %v329_v61, %v328_v60 }
  0xad   : > { %331 = vst [vmem:[#allocation2] sm:$0xff] %v330_v62 }
  0xae PF: > { %s482_s21 = sshll.u32 %s721_s12, 3  ;;  %s350_s18 = sshll.u32 %s928_s8, 4  ;;  %s351_s18 = int_to_ptr.vmem [resolvable:$true] %s350_s18 }
  0xaf   : > { %s348_s4 = scalar_lea.hbm %s976_s2, %s482_s21  ;;  %s338_s25 = scalar_lea.sflag [#allocation5], %s909_s30 }
  0xb0   : > { %s352_s20 = sshll.u32 %s348_s4, 4  ;;  %s663_s12 = scalar_lea.hbm %s976_s2, 16  ;;  %s353_s20 = int_to_ptr.hbm [resolvable:$true] %s352_s20 }
  0xb1   : > { %s657_s27 = sshra.s32 %s353_s20, 4  ;;  %s658_s27 = int_to_ptr.hbm [resolvable:$true] %s657_s27 }
  0xb2   : > { %s659_s3 = scalar_lea.hbm %s658_s27, 8  ;;  %p664_p2 = scmp.lt.s32.totalorder %s658_s27, %s976_s2 }
  0xb3   : > { %p660_p10 = scmp.ne.s32.totalorder %s658_s27, %s659_s3  ;;  %p665_p3 = scmp.lt.s32.totalorder %s663_s12, %s659_s3 }
  0xb4   : > { %v335_v63 = vld [vmem:[#allocation2] sm:$0xff] }
  0xb5   : > { %336 = vst [vmem:[%s928_s8] sm:$0xff] %v335_v63  ;;  %p661_p13 = pnand %p660_p10, %p804_p9  ;;  %p666_p0 = por %p665_p3, %p664_p2 }
  0xb7   : > { %p662_p1 = pneg %p661_p13 }
  0xb9   : > { %p667_p5 = pnand %p666_p0, %p662_p1 }
  0xbb   : > { %670 = shalt.err (!%p667_p5)
}
  0xbc   : > { %489 = dma.vmem_to_hbm [thread:$0]  (%p804_p9), %s351_s18, 128, %s353_s20, %s338_s25  }
  0xbd PF: > { %s364_s30 = sand.u32 1, %s709_s9   ;;  %p492_p6 = pnand %p459_p12, %p811_p11 }
  0xbe   : > { %s365_s16 = scalar_lea.sflag [#allocation5], %s364_s30 }
  0xbf   : > { %p493_p7 = pneg %p492_p6 }
  0xc1   : > { %704 = dma.done.wait (%p493_p7), %s365_s16, 128  }
  0xc2   : > { %706 = vsyncadd (%p493_p7), %s365_s16, 4294967168  ;;  %s21_s14 = sadd.s32 1, %s729_s14   ;;  %s983_s9 = smov %s713_s10 }
  0xc3   : > { %p18_p4 = scmp.ge.s32.totalorder %s21_s14, 4   ;;  %s984_s10 = smov %s717_s11 }
  0xc4   : > { %s985_s11 = smov %s809_s23  ;;  %s986_s12 = smov %s725_s13 }
  0xc5   : > { %s987_s13 = smov %s989_s17  ;;  %20 = sbr.rel (!%p18_p4) target bundleno = 8 (0x8), region = 102 }
  0xca   :  { %371 = vsyncpa [#allocation4], 1 }
  0xcb   :  { %373 = vsyncpa [#allocation4 + $0x1], 1 }
  0xcc   :  { %374 = vsyncpa [#allocation7], 1 }
  0xcd   :  { %376 = vsyncpa [#allocation7 + $0x1], 1 }
  0xce   :  { %377 = vsyncpa [#allocation5], 1 }
  0xcf   :  { %379 = vsyncpa [#allocation5 + $0x1], 1 }

</bundles_post_ra>
